<compile_context>
chip_gen: v7x
topology: tpu7x:2x2x1
jax: 0.10.0
libtpu: 0.0.40
codegen_flags: <defaults>
</compile_context>

<pallas_src>
import math

import jax
import jax.numpy as jnp
from jax.experimental import pallas as pl
from jax.experimental.pallas import tpu as pltpu


def lstm_recurrence_kernel(gx_ref, h0_ref, c0_ref, w_hh_t_ref,
                           enc_out_ref, h_scr, c_scr):
    """Serial LSTM recurrence.

    gx_ref:     (T, B, 4H)  precomputed input-side gate pre-activations
                            (attention-weighted input @ W_ih^T + b_ih + b_hh)
    h0/c0:      (B, H)      initial hidden / cell state
    w_hh_t:     (H, 4H)     recurrent weight, transposed (PyTorch gate order i,f,g,o)
    enc_out:    (T, B, H)   hidden state per timestep
    """
    T = gx_ref.shape[0]
    H = h0_ref.shape[1]

    # Recurrent state lives in VMEM scratch across the time loop.
    h_scr[...] = h0_ref[...]
    c_scr[...] = c0_ref[...]
    w_hh_t = w_hh_t_ref[...]

    @pl.loop(0, T)
    def _step(t):
        h = h_scr[...]                                   # (B, H)
        c = c_scr[...]                                   # (B, H)

        # One MXU matmul per step on the serial chain; the input-side term was
        # batched outside the loop.
        gates = gx_ref[t] + jnp.dot(h, w_hh_t,
                                    preferred_element_type=jnp.float32)  # (B, 4H)

        # Two whole-vreg EUP passes, then static lane slices (i, f, g, o).
        sg = jax.nn.sigmoid(gates)
        tg = jnp.tanh(gates)
        i_g = sg[:, 0 * H:1 * H]
        f_g = sg[:, 1 * H:2 * H]
        g_g = tg[:, 2 * H:3 * H]
        o_g = sg[:, 3 * H:4 * H]

        c_new = f_g * c + i_g * g_g
        h_new = o_g * jnp.tanh(c_new)

        h_scr[...] = h_new
        c_scr[...] = c_new
        enc_out_ref[t] = h_new


@jax.jit
def attention_encoder_forward(x, h0, c0, params):
    """x: (B, T, D) f32; returns (attention (B,T,D), input_encoded (B,T,H))."""
    B, T, D = x.shape
    H = h0.shape[1]

    # --- attention (time-invariant: h/c terms and bias cancel in the softmax) ---
    w_attn = params["attn_w"]                            # (1, 2H + T)
    w_x = w_attn[0, 2 * H:2 * H + T]                     # (T,)
    # logits[b, d] = sum_t w_x[t] * x[b, t, d]   (the only softmax-axis-varying term)
    logits = jnp.einsum("btd,t->bd", x, w_x)             # (B, D)
    at = jax.nn.softmax(logits, axis=1)                  # (B, D), same for every t
    attention = jnp.broadcast_to(at[:, None, :], (B, T, D))

    # --- input-side gate pre-activations for all timesteps (one batched matmul) ---
    wi = at[:, None, :] * x                              # (B, T, D)
    b_gates = (params["b_ih"] + params["b_hh"]).reshape(1, 1, 4 * H)
    gates_x = jnp.einsum("btd,gd->tbg", wi, params["w_ih"]) + b_gates   # (T, B, 4H)

    w_hh_t = params["w_hh"].T                            # (H, 4H)

    vmem = pl.BlockSpec(memory_space=pltpu.MemorySpace.VMEM)
    enc_t = pl.pallas_call(
        lstm_recurrence_kernel,
        out_shape=jax.ShapeDtypeStruct((T, B, H), jnp.float32),
        in_specs=[vmem, vmem, vmem, vmem],
        out_specs=vmem,
        scratch_shapes=[pltpu.VMEM((B, H), jnp.float32),
                        pltpu.VMEM((B, H), jnp.float32)],
    )(gates_x, h0, c0, w_hh_t)

    input_encoded = jnp.transpose(enc_t, (1, 0, 2))      # (B, T, H)
    return attention, input_encoded


def reference_forward(x, h0, c0, params):
    """Pure-JAX replica of the PyTorch forward (for correctness check)."""
    B, T, D = x.shape
    H = h0.shape[1]
    w_attn = params["attn_w"][0]
    b_attn = params["attn_b"][0]
    w_ih, w_hh = params["w_ih"], params["w_hh"]
    b_ih, b_hh = params["b_ih"], params["b_hh"]
    h, c = h0, c0
    attns, encs = [], []
    x_perm = jnp.transpose(x, (0, 2, 1))                 # (B, D, T)
    for t in range(T):
        rep_h = jnp.broadcast_to(h[:, None, :], (B, D, H))
        rep_c = jnp.broadcast_to(c[:, None, :], (B, D, H))
        x_cat = jnp.concatenate([rep_h, rep_c, x_perm], axis=2)   # (B, D, 2H+T)
        et = x_cat.reshape(-1, 2 * H + T) @ w_attn + b_attn
        at = jax.nn.softmax(et.reshape(B, D), axis=1)
        wi = at * x[:, t, :]
        gates = wi @ w_ih.T + b_ih + h @ w_hh.T + b_hh
        i_g = jax.nn.sigmoid(gates[:, 0:H])
        f_g = jax.nn.sigmoid(gates[:, H:2 * H])
        g_g = jnp.tanh(gates[:, 2 * H:3 * H])
        o_g = jax.nn.sigmoid(gates[:, 3 * H:4 * H])
        c = f_g * c + i_g * g_g
        h = o_g * jnp.tanh(c)
        attns.append(at)
        encs.append(h)
    return jnp.stack(attns, axis=1), jnp.stack(encs, axis=1)


if __name__ == "__main__":
    # Small shapes consistent with the module: batch=2, num_lags(seq)=8,
    # input_dim(features)=4, hidden_size=32. architecture='lstm', matrix_rep=True.
    B, T, D, H = 2, 8, 4, 32

    key = jax.random.PRNGKey(0)
    keys = jax.random.split(key, 8)

    x = jax.random.normal(keys[0], (B, T, D), dtype=jnp.float32)

    # PyTorch forward re-draws h0/c0 with xavier_normal_ on a (1, B, H) tensor;
    # replicate that init deterministically here (std = sqrt(2/(fan_in+fan_out))).
    std_hc = math.sqrt(2.0 / (B * H + 1 * H))
    h0 = std_hc * jax.random.normal(keys[1], (B, H), dtype=jnp.float32)
    c0 = std_hc * jax.random.normal(keys[2], (B, H), dtype=jnp.float32)

    params = {
        # nn.Linear(2H + num_lags, 1)
        "attn_w": 0.1 * jax.random.normal(keys[3], (1, 2 * H + T), jnp.float32),
        "attn_b": 0.1 * jax.random.normal(keys[4], (1,), jnp.float32),
        # nn.LSTM(input_size=D, hidden_size=H, num_layers=1)
        "w_ih": 0.1 * jax.random.normal(keys[5], (4 * H, D), jnp.float32),
        "w_hh": 0.1 * jax.random.normal(keys[6], (4 * H, H), jnp.float32),
        "b_ih": 0.1 * jax.random.normal(keys[7], (4 * H,), jnp.float32),
        "b_hh": jnp.zeros((4 * H,), jnp.float32),
    }

    # TODO(synk): denoising noise injection (torch.randn + numpy RNG, training
    # mode only) and the 'gru' architecture branch are not implemented; this
    # covers the eval-mode 'lstm' forward path.

    attention, input_encoded = attention_encoder_forward(x, h0, c0, params)
    jax.block_until_ready((attention, input_encoded))

    ref_attention, ref_encoded = reference_forward(x, h0, c0, params)
    assert jnp.allclose(attention, ref_attention, atol=1e-5, rtol=1e-5)
    assert jnp.allclose(input_encoded, ref_encoded, atol=1e-5, rtol=1e-5)

    print("KERNEL_OK")
</pallas_src>

<mosaic_0001>
module attributes {stable_mosaic.version = 11 : i64} {
  func.func @lstm_recurrence_kernel(%arg0: memref<8x2x128xf32, #tpu.memory_space<vmem>>, %arg1: memref<2x32xf32, #tpu.memory_space<vmem>>, %arg2: memref<2x32xf32, #tpu.memory_space<vmem>>, %arg3: memref<32x128xf32, #tpu.memory_space<vmem>>, %arg4: memref<8x2x32xf32, #tpu.memory_space<vmem>>, %arg5: memref<2x32xf32, #tpu.memory_space<vmem>>, %arg6: memref<2x32xf32, #tpu.memory_space<vmem>>) attributes {dimension_semantics = [], scalar_prefetch = 0 : i64, scratch_operands = 2 : i64, tpu.core_type = #tpu.core_type<tc>} {
    %c0 = arith.constant 0 : index
    %c0_0 = arith.constant 0 : index
    %0 = vector.load %arg1[%c0, %c0_0] : memref<2x32xf32, #tpu.memory_space<vmem>>, vector<2x32xf32>
    %c0_1 = arith.constant 0 : index
    %c0_2 = arith.constant 0 : index
    %1 = vector.load %arg5[%c0_1, %c0_2] : memref<2x32xf32, #tpu.memory_space<vmem>>, vector<2x32xf32>
    tpu.vector_store %arg5[%c0_1, %c0_2], %0 {strides = array<i32>} : memref<2x32xf32, #tpu.memory_space<vmem>>, vector<2x32xf32>,
    %c0_3 = arith.constant 0 : index
    %c0_4 = arith.constant 0 : index
    %2 = vector.load %arg2[%c0_3, %c0_4] : memref<2x32xf32, #tpu.memory_space<vmem>>, vector<2x32xf32>
    %c0_5 = arith.constant 0 : index
    %c0_6 = arith.constant 0 : index
    %3 = vector.load %arg6[%c0_5, %c0_6] : memref<2x32xf32, #tpu.memory_space<vmem>>, vector<2x32xf32>
    tpu.vector_store %arg6[%c0_5, %c0_6], %2 {strides = array<i32>} : memref<2x32xf32, #tpu.memory_space<vmem>>, vector<2x32xf32>,
    %c0_7 = arith.constant 0 : index
    %c0_8 = arith.constant 0 : index
    %4 = vector.load %arg3[%c0_7, %c0_8] : memref<32x128xf32, #tpu.memory_space<vmem>>, vector<32x128xf32>
    %c0_i32 = arith.constant 0 : i32
    %c8_i32 = arith.constant 8 : i32
    %5 = arith.addi %c0_i32, %c8_i32 : i32
    %c1_i32 = arith.constant 1 : i32
    scf.for %arg7 = %c0_i32 to %5 step %c1_i32  : i32 {
      %c1_i32_10 = arith.constant 1 : i32
      %6 = arith.muli %arg7, %c1_i32_10 : i32
      %c0_i32_11 = arith.constant 0 : i32
      %7 = arith.addi %c0_i32_11, %6 : i32
      %c0_12 = arith.constant 0 : index
      %c0_13 = arith.constant 0 : index
      %8 = vector.load %arg5[%c0_12, %c0_13] : memref<2x32xf32, #tpu.memory_space<vmem>>, vector<2x32xf32>
      %c0_14 = arith.constant 0 : index
      %c0_15 = arith.constant 0 : index
      %9 = vector.load %arg6[%c0_14, %c0_15] : memref<2x32xf32, #tpu.memory_space<vmem>>, vector<2x32xf32>
      %10 = arith.index_cast %7 : i32 to index
      %c0_16 = arith.constant 0 : index
      %c0_17 = arith.constant 0 : index
      %11 = vector.load %arg0[%10, %c0_16, %c0_17] : memref<8x2x128xf32, #tpu.memory_space<vmem>>, vector<1x2x128xf32>
      %12 = vector.shape_cast %11 : vector<1x2x128xf32> to vector<2x128xf32>
      %cst = arith.constant dense<0.000000e+00> : vector<2x128xf32>
      %13 = tpu.matmul %8, %4, %cst {dimension_numbers = #tpu.dot_dimension_numbers<[1], [0], [0], [1], [0, 0, 1, 1], [], []>} : vector<2x32xf32>, vector<32x128xf32>, vector<2x128xf32> -> vector<2x128xf32>
      %14 = arith.addf %12, %13 : vector<2x128xf32>
      %15 = arith.negf %14 : vector<2x128xf32>
      %16 = math.exp %15 : vector<2x128xf32>
      %cst_18 = arith.constant 1.000000e+00 : f32
      %17 = vector.broadcast %cst_18 : f32 to vector<2x128xf32>
      %18 = arith.addf %17, %16 : vector<2x128xf32>
      %19 = arith.divf %17, %18 : vector<2x128xf32>
      %20 = math.tanh %14 : vector<2x128xf32>
      %21 = vector.extract_strided_slice %19 {offsets = [0, 0], sizes = [2, 32], strides = [1, 1]} : vector<2x128xf32> to vector<2x32xf32>
      %22 = vector.extract_strided_slice %19 {offsets = [0, 32], sizes = [2, 32], strides = [1, 1]} : vector<2x128xf32> to vector<2x32xf32>
      %23 = vector.extract_strided_slice %20 {offsets = [0, 64], sizes = [2, 32], strides = [1, 1]} : vector<2x128xf32> to vector<2x32xf32>
      %24 = vector.extract_strided_slice %19 {offsets = [0, 96], sizes = [2, 32], strides = [1, 1]} : vector<2x128xf32> to vector<2x32xf32>
      %25 = arith.mulf %22, %9 : vector<2x32xf32>
      %26 = arith.mulf %21, %23 : vector<2x32xf32>
      %27 = arith.addf %25, %26 : vector<2x32xf32>
      %28 = math.tanh %27 : vector<2x32xf32>
      %29 = arith.mulf %24, %28 : vector<2x32xf32>
      %c0_19 = arith.constant 0 : index
      %c0_20 = arith.constant 0 : index
      %30 = vector.load %arg5[%c0_19, %c0_20] : memref<2x32xf32, #tpu.memory_space<vmem>>, vector<2x32xf32>
      tpu.vector_store %arg5[%c0_19, %c0_20], %29 {strides = array<i32>} : memref<2x32xf32, #tpu.memory_space<vmem>>, vector<2x32xf32>,
      %c0_21 = arith.constant 0 : index
      %c0_22 = arith.constant 0 : index
      %31 = vector.load %arg6[%c0_21, %c0_22] : memref<2x32xf32, #tpu.memory_space<vmem>>, vector<2x32xf32>
      tpu.vector_store %arg6[%c0_21, %c0_22], %27 {strides = array<i32>} : memref<2x32xf32, #tpu.memory_space<vmem>>, vector<2x32xf32>,
      %32 = arith.index_cast %7 : i32 to index
      %c0_23 = arith.constant 0 : index
      %c0_24 = arith.constant 0 : index
      %33 = vector.load %arg4[%32, %c0_23, %c0_24] : memref<8x2x32xf32, #tpu.memory_space<vmem>>, vector<1x2x32xf32>
      %34 = vector.shape_cast %33 : vector<1x2x32xf32> to vector<2x32xf32>
      %35 = vector.shape_cast %29 : vector<2x32xf32> to vector<1x2x32xf32>
      tpu.vector_store %arg4[%32, %c0_23, %c0_24], %35 {strides = array<i32>} : memref<8x2x32xf32, #tpu.memory_space<vmem>>, vector<1x2x32xf32>,
    }
    %c8_i32_9 = arith.constant 8 : i32
    return
  }
}

</mosaic_0001>

<bundles_post_ra>
// kernel: attention_encoder_forward.1
= control target key start
LH: loop header
LB: loop body
LE: loop exit
PB: predicated region body
PF: predicated region fallthrough
CT: control target
= control target key end

     0   :  { %vm18_vm0 = vcmask 254976   ;;  %s275_s25 = smov 0   ;;  %s299_s0 = inlined_call_operand.vmem [shape: f32[8,2,128], index: 0, kind: input, shape index: {}]   ;;  %s300_s1 = inlined_call_operand.vmem [shape: f32[2,32], index: 1, kind: input, shape index: {}]   ;;  %s301_s3 = inlined_call_operand.vmem [shape: f32[32,128], index: 3, kind: input, shape index: {}]   ;;  %s302_s4 = inlined_call_operand.vmem [shape: f32[8,2,32], index: 4, kind: output, shape index: {}]   ;;  %s303_s2 = inlined_call_operand.vmem [shape: f32[2,32], index: 2, kind: input, shape index: {}]  }
   0x1   :  { %v17_v0 = vld [vmem:[%s300_s1] sm:$0x3]  ;;  %v267_v3 = vld [vmem:[%s301_s3 + $0x8] sm:$0xff]  ;;  %v24_v4 = vld [vmem:[%s301_s3 + $0x10] sm:$0xff] }
   0x2   :  { %v20_v1 = vld [vmem:[%s303_s2] sm:$0x3]  ;;  %19 = vst.msk [vmem:[#allocation2] sm:$0x3] %vm18_vm0, %v17_v0  ;;  %v25_v5 = vld [vmem:[%s301_s3 + $0x18] sm:$0xff] }
   0x3   :  { %v260_v2 = vld [vmem:[%s301_s3] sm:$0xff]  ;;  %21 = vst.msk [vmem:[#allocation3] sm:$0x3] %vm18_vm0, %v20_v1 }
   0x4 LB: > { %v185_v6 = vpack.c.bf16 %v267_v3, %v260_v2  ;;  %v220_v7 = vmov 0.0|0.0   ;;  %v188_v8 = vpack.c.bf16 %v25_v5, %v24_v4  ;;  %vm221_vm1 = vmmov 0   ;;  %s165_s3 = sshll.u32 %s218_s25, 1  ;;  %s223_s29 = smov 64   ;;  %s218_s25 = sphi %s275_s25, %s31_s25  }
   0x5   : > { %184 = vmatprep.subr.bf16.mxu0 %v220_v7  ;;  %v222_v9 = vmov 0.0   ;;  %vm37_vm2 = vcmask 261120   ;;  %s35_s28 = scalar_lea.vmem %s299_s0, %s165_s3  ;;  %s224_s30 = smov 32  }
   0x6   : > { %186 = vmatpush3.bf16.msra.mxu0 %v185_v6  ;;  %181 = vmatprep.mubr.msk.f32.mxu0 %vm221_vm1, %v222_v9  ;;  %v36_v11 = vld [vmem:[%s35_s28] sm:$0x3]  ;;  %s225_s5 = smov 96   ;;  %s150_s8 = scalar_lea.vmem %s302_s4, %s165_s3 }
   0x7   : > { %187 = vmatprep.subr.bf16.mxu0 %v220_v7  ;;  %s31_s25 = sadd.s32 1, %s218_s25  }
   0x8   : > { %p28_p0 = scmp.ge.s32.totalorder %s31_s25, 8  }
   0x9   : > { %v32_v10 = vld [vmem:[#allocation2] sm:$0x3] }
   0xa   : > { %189 = vmatpush3.bf16.msra.mxu0 %v188_v8  ;;  %v33_v16 = vld [vmem:[#allocation3] sm:$0x3] }
   0xd   : > { %182 = vmatmul.mubr.msk.f32.vlgmr.msra.gmra.mrb[0].mxu0 %vm37_vm2, %v32_v10 }
  0xe0   : > { %v107_v12 = vpop.f32.mrb[0].mxu0 }
  0xe1   : > { %v111_v13 = vadd.f32 %v107_v12, %v36_v11  ;;  %v183_v14 = vpop.f32.mrb[1].mxu0 }
  0xe3   : > { %204 = vtanh.f32 %v111_v13  ;;  %v167_v17 = vmul.f32 -1.442695, %v111_v13 }
  0xe5   : > { %206 = vpow2.f32 %v167_v17 }
  0xed   : > { %v205_v15 = vpop.eup %204 }
  0xee   : > { %125 = vrot.lane.b32.xlu0 %v205_v15, %s223_s29 }
  0xef   : > { %v207_v18 = vpop.eup %206 }
  0xf0   : > { %v115_v19 = vadd.f32 1.0, %v207_v18 }
  0xf2   : > { %120 = vrot.lane.b32.xlu0 %v33_v16, %s224_s30  ;;  %208 = vrcp.f32 %v115_v19 }
  0xfc   : > { %v209_v20 = vpop.eup %208 }
 0x160   : > { %v126_v21 = vpop.permute.xlu0 %125 }
 0x161   : > { %v128_v22 = vmul.f32 %v209_v20, %v126_v21 }
 0x163   : > { %130 = vrot.lane.b32.xlu1 %v128_v22, %s224_s30 }
 0x164   : > { %v121_v23 = vpop.permute.xlu0 %120 }
 0x165   : > { %v123_v24 = vmul.f32 %v209_v20, %v121_v23 }
 0x1d5   : > { %v131_v25 = vpop.permute.xlu1 %130 }
 0x1d6   : > { %v133_v26 = vadd.f32 %v131_v25, %v123_v24 }
 0x1d8   : > { %210 = vtanh.f32 %v133_v26 }
 0x1e2   : > { %v211_v27 = vpop.eup %210 }
 0x1e3   : > { %136 = vrot.lane.b32.xlu1 %v211_v27, %s223_s29 }
 0x1e7   : > { %146 = vrot.lane.b32.xlu1 %v133_v26, %s225_s5 }
 0x255   : > { %v137_v28 = vpop.permute.xlu1 %136 }
 0x256   : > { %v139_v29 = vmul.f32 %v209_v20, %v137_v28 }
 0x258   : > { %141 = vrot.lane.b32.xlu0 %v139_v29, %s224_s30 }
 0x259   : > { %v147_v30 = vpop.permute.xlu1 %146 }
 0x25a   : > { %149 = vst.msk [vmem:[#allocation3] sm:$0x3] %vm18_vm0, %v147_v30 }
 0x2c5   :  { %30 = sbr.rel (!%p28_p0) target bundleno = 4 (0x4), region = 45 }
 0x2ca   : > { %v142_v31 = vpop.permute.xlu0 %141 }
 0x2cb   : > { %144 = vst.msk [vmem:[#allocation2] sm:$0x3] %vm18_vm0, %v142_v31  ;;  %151 = vst.msk [vmem:[%s150_s8] sm:$0x3] %vm18_vm0, %v142_v31 }

</bundles_post_ra>
